<compile_context>
chip_gen: v5e
topology: v5e:2x2
jax: 0.10.0
libtpu: 0.0.40
codegen_flags: <defaults>
</compile_context>

<pallas_src>
import math
import jax
import jax.numpy as jnp
from jax.experimental import pallas as pl
from jax.experimental.pallas import tpu as pltpu

EPS = 1e-06
HIDDEN = 64          # logical hidden size (matches the torch module)
HIDDEN_PAD = 128     # lane-padded hidden size used inside the kernel
ALPHA = 0.01


# ----------------------------------------------------------------------------
# Fused Pallas kernel: statistics network T on (x, z) AND (x, z_marg),
# both batch means emitted in one (2, 1) f32 output.
# ----------------------------------------------------------------------------
def fused_t_kernel(x_ref, z_ref, zm_ref,
                   w1x_ref, w1z_ref, b1_ref,
                   w2_ref, b2_ref,
                   w3_ref, b3_ref,
                   out_ref):
    B = x_ref.shape[0]

    x = x_ref[...]                                   # (B, X)
    z = z_ref[...]                                   # (B, Z)
    zm = zm_ref[...]                                 # (B, Z)

    # ---- layer 1: cat(x, z) @ W1 == x @ W1_x + z @ W1_z -----------------
    # x-part is shared between joint and marginal passes; z / z_marg share
    # one stacked matmul.
    ax = jnp.dot(x, w1x_ref[...], preferred_element_type=jnp.float32)      # (B, Hp)
    z_all = jnp.concatenate([z, zm], axis=0)                               # (2B, Z)
    az_all = jnp.dot(z_all, w1z_ref[...], preferred_element_type=jnp.float32)  # (2B, Hp)

    b1 = b1_ref[...]                                                       # (1, Hp)
    ax2 = jnp.concatenate([ax, ax], axis=0)                                # (2B, Hp)
    h1 = jnp.maximum(ax2 + az_all + b1, 0.0)                               # ReLU

    # ---- layer 2: one stacked (2B, Hp) x (Hp, Hp) matmul -----------------
    h2 = jnp.dot(h1, w2_ref[...], preferred_element_type=jnp.float32) + b2_ref[...]
    h2 = jnp.maximum(h2, 0.0)                                              # (2B, Hp)

    # ---- layer 3 folded through the batch mean ---------------------------
    # mean_b(h2 @ w3 + b3) = mean_b(h2) @ w3 + b3  (w3 stored as (1, Hp) row).
    mean_j = jnp.mean(h2[:B], axis=0, keepdims=True)                       # (1, Hp)
    mean_m = jnp.mean(h2[B:], axis=0, keepdims=True)                       # (1, Hp)
    means = jnp.concatenate([mean_j, mean_m], axis=0)                      # (2, Hp)

    scores = jnp.sum(means * w3_ref[...], axis=1, keepdims=True) + b3_ref[...]  # (2, 1)
    out_ref[...] = scores                                                  # [t; t_marg]


def _full_spec(shape):
    # whole-array block (legal since block dims equal the full array dims)
    return pl.BlockSpec(shape, lambda: tuple(0 for _ in shape))


def t_pair(x, z, z_marg, params):
    """Returns (t, t_marg) = (mean_b T(x,z), mean_b T(x,z_marg)) from one call."""
    w1x, w1z, b1, w2, b2, w3, b3 = params
    args = (x, z, z_marg, w1x, w1z, b1, w2, b2, w3, b3)
    out = pl.pallas_call(
        fused_t_kernel,
        out_shape=jax.ShapeDtypeStruct((2, 1), jnp.float32),
        in_specs=[_full_spec(a.shape) for a in args],
        out_specs=_full_spec((2, 1)),
    )(*args)
    return out[0, 0], out[1, 0]


# ----------------------------------------------------------------------------
# Glue: spectral norm (power iteration), parameter init with lane padding
# ----------------------------------------------------------------------------
def spectral_normalize(w, key, n_iter=10):
    """Divide w by its largest singular value (deterministic power iteration).

    Mirrors torch.nn.utils.spectral_norm's effect on the weight matrix
    (sigma(W) == sigma(W.T), so the (in, out) storage layout is irrelevant).
    """
    u = jax.random.normal(key, (w.shape[1],), dtype=w.dtype)
    u = u / (jnp.linalg.norm(u) + EPS)
    v = w @ u
    v = v / (jnp.linalg.norm(v) + EPS)
    for _ in range(n_iter - 1):
        u = w.T @ v
        u = u / (jnp.linalg.norm(u) + EPS)
        v = w @ u
        v = v / (jnp.linalg.norm(v) + EPS)
    u = w.T @ v
    u = u / (jnp.linalg.norm(u) + EPS)
    sigma = v @ (w @ u)
    return w / sigma


def init_linear(key, fan_in, fan_out):
    # Deterministic stand-in for torch.nn.Linear's default (kaiming-uniform) init.
    kw, kb = jax.random.split(key)
    bound = 1.0 / math.sqrt(fan_in)
    w = jax.random.uniform(kw, (fan_in, fan_out), jnp.float32, -bound, bound)
    b = jax.random.uniform(kb, (1, fan_out), jnp.float32, -bound, bound)
    return w, b


def make_statistics_network(key, x_dim, z_dim, hidden=HIDDEN, hidden_pad=HIDDEN_PAD):
    dim = x_dim + z_dim
    k1, k2, k3, s1, s2, s3 = jax.random.split(key, 6)
    w1, b1 = init_linear(k1, dim, hidden)
    w2, b2 = init_linear(k2, hidden, hidden)
    w3, b3 = init_linear(k3, hidden, 1)
    w1 = spectral_normalize(w1, s1)
    w2 = spectral_normalize(w2, s2)
    w3 = spectral_normalize(w3, s3)

    # Zero-pad hidden 64 -> 128 so all activations are lane-dense. Exact:
    # padded lanes carry 0 through every ReLU and contribute 0 to the output.
    p = hidden_pad - hidden
    w1p = jnp.pad(w1, ((0, 0), (0, p)))          # (D, Hp)
    b1p = jnp.pad(b1, ((0, 0), (0, p)))          # (1, Hp)
    w2p = jnp.pad(w2, ((0, p), (0, p)))          # (Hp, Hp)
    b2p = jnp.pad(b2, ((0, 0), (0, p)))          # (1, Hp)
    w3p = jnp.pad(w3.T, ((0, 0), (0, p)))        # (1, Hp) row vector

    # Split W1 by input rows so the kernel never needs cat(x, z) in HBM.
    w1x = w1p[:x_dim]                            # (X, Hp)
    w1z = w1p[x_dim:]                            # (Z, Hp)
    return (w1x, w1z, b1p, w2p, b2p, w3p, b3)


# ----------------------------------------------------------------------------
# WassersteinDual.forward
# ----------------------------------------------------------------------------
def wasserstein_dual_forward(x, z, params, perm_key,
                             running_mean=None, alpha=ALPHA):
    """Returns (-t + t_marg, new_running_mean).

    running_mean=None corresponds to the torch module's initial `running_mean = 0`
    (first call initializes it to t_marg; afterwards it is an EMA).
    """
    perm = jax.random.permutation(perm_key, x.shape[0])
    z_marg = z[perm]                              # z[torch.randperm(B)]

    t, t_marg = t_pair(x, z, z_marg, params)      # one fused Pallas call

    # dual_ema_loss: state update only, does not feed the returned loss.
    if running_mean is None:
        new_running_mean = t_marg
    else:
        new_running_mean = alpha * t_marg + (1.0 - alpha) * running_mean

    return -t + t_marg, new_running_mean


if __name__ == "__main__":
    key = jax.random.PRNGKey(0)
    k_x, k_z, k_params, k_perm = jax.random.split(key, 4)

    B, X_DIM, Z_DIM = 8, 16, 16

    x = jax.random.normal(k_x, (B, X_DIM), jnp.float32)
    z = jax.random.normal(k_z, (B, Z_DIM), jnp.float32)

    params = make_statistics_network(k_params, X_DIM, Z_DIM)

    loss, running_mean = wasserstein_dual_forward(x, z, params, k_perm)
    loss = jax.block_until_ready(loss)
    running_mean = jax.block_until_ready(running_mean)

    assert loss.shape == () and loss.dtype == jnp.float32
    print("KERNEL_OK")
</pallas_src>

<mosaic_0001>
module attributes {stable_mosaic.version = 11 : i64} {
  func.func @fused_t_kernel(%arg0: memref<8x16xf32, #tpu.memory_space<vmem>>, %arg1: memref<8x16xf32, #tpu.memory_space<vmem>>, %arg2: memref<8x16xf32, #tpu.memory_space<vmem>>, %arg3: memref<16x128xf32, #tpu.memory_space<vmem>>, %arg4: memref<16x128xf32, #tpu.memory_space<vmem>>, %arg5: memref<1x128xf32, #tpu.memory_space<vmem>>, %arg6: memref<128x128xf32, #tpu.memory_space<vmem>>, %arg7: memref<1x128xf32, #tpu.memory_space<vmem>>, %arg8: memref<1x128xf32, #tpu.memory_space<vmem>>, %arg9: memref<1x1xf32, #tpu.memory_space<vmem>>, %arg10: memref<2x1xf32, #tpu.memory_space<vmem>>) attributes {dimension_semantics = [], scalar_prefetch = 0 : i64, scratch_operands = 0 : i64, tpu.core_type = #tpu.core_type<tc>} {
    %c0 = arith.constant 0 : index
    %c0_0 = arith.constant 0 : index
    %0 = vector.load %arg0[%c0, %c0_0] : memref<8x16xf32, #tpu.memory_space<vmem>>, vector<8x16xf32>
    %c0_1 = arith.constant 0 : index
    %c0_2 = arith.constant 0 : index
    %1 = vector.load %arg1[%c0_1, %c0_2] : memref<8x16xf32, #tpu.memory_space<vmem>>, vector<8x16xf32>
    %c0_3 = arith.constant 0 : index
    %c0_4 = arith.constant 0 : index
    %2 = vector.load %arg2[%c0_3, %c0_4] : memref<8x16xf32, #tpu.memory_space<vmem>>, vector<8x16xf32>
    %c0_5 = arith.constant 0 : index
    %c0_6 = arith.constant 0 : index
    %3 = vector.load %arg3[%c0_5, %c0_6] : memref<16x128xf32, #tpu.memory_space<vmem>>, vector<16x128xf32>
    %cst = arith.constant dense<0.000000e+00> : vector<8x128xf32>
    %4 = tpu.matmul %0, %3, %cst {dimension_numbers = #tpu.dot_dimension_numbers<[1], [0], [0], [1], [0, 0, 1, 1], [], []>} : vector<8x16xf32>, vector<16x128xf32>, vector<8x128xf32> -> vector<8x128xf32>
    %5 = tpu.concatenate %1, %2 in 0 : vector<8x16xf32>, vector<8x16xf32> -> vector<16x16xf32>
    %c0_7 = arith.constant 0 : index
    %c0_8 = arith.constant 0 : index
    %6 = vector.load %arg4[%c0_7, %c0_8] : memref<16x128xf32, #tpu.memory_space<vmem>>, vector<16x128xf32>
    %cst_9 = arith.constant dense<0.000000e+00> : vector<16x128xf32>
    %7 = tpu.matmul %5, %6, %cst_9 {dimension_numbers = #tpu.dot_dimension_numbers<[1], [0], [0], [1], [0, 0, 1, 1], [], []>} : vector<16x16xf32>, vector<16x128xf32>, vector<16x128xf32> -> vector<16x128xf32>
    %c0_10 = arith.constant 0 : index
    %c0_11 = arith.constant 0 : index
    %8 = vector.load %arg5[%c0_10, %c0_11] : memref<1x128xf32, #tpu.memory_space<vmem>>, vector<1x128xf32>
    %9 = tpu.concatenate %4, %4 in 0 : vector<8x128xf32>, vector<8x128xf32> -> vector<16x128xf32>
    %10 = arith.addf %9, %7 : vector<16x128xf32>
    %11 = vector.broadcast %8 : vector<1x128xf32> to vector<16x128xf32>
    %12 = arith.addf %10, %11 : vector<16x128xf32>
    %cst_12 = arith.constant 0.000000e+00 : f32
    %13 = vector.broadcast %cst_12 : f32 to vector<16x128xf32>
    %14 = arith.maximumf %12, %13 : vector<16x128xf32>
    %c0_13 = arith.constant 0 : index
    %c0_14 = arith.constant 0 : index
    %15 = vector.load %arg6[%c0_13, %c0_14] : memref<128x128xf32, #tpu.memory_space<vmem>>, vector<128x128xf32>
    %cst_15 = arith.constant dense<0.000000e+00> : vector<16x128xf32>
    %16 = tpu.matmul %14, %15, %cst_15 {dimension_numbers = #tpu.dot_dimension_numbers<[1], [0], [0], [1], [0, 0, 1, 1], [], []>} : vector<16x128xf32>, vector<128x128xf32>, vector<16x128xf32> -> vector<16x128xf32>
    %c0_16 = arith.constant 0 : index
    %c0_17 = arith.constant 0 : index
    %17 = vector.load %arg7[%c0_16, %c0_17] : memref<1x128xf32, #tpu.memory_space<vmem>>, vector<1x128xf32>
    %18 = vector.broadcast %17 : vector<1x128xf32> to vector<16x128xf32>
    %19 = arith.addf %16, %18 : vector<16x128xf32>
    %cst_18 = arith.constant 0.000000e+00 : f32
    %20 = vector.broadcast %cst_18 : f32 to vector<16x128xf32>
    %21 = arith.maximumf %19, %20 : vector<16x128xf32>
    %22 = vector.extract_strided_slice %21 {offsets = [0, 0], sizes = [8, 128], strides = [1, 1]} : vector<16x128xf32> to vector<8x128xf32>
    %cst_19 = arith.constant dense<0.000000e+00> : vector<128xf32>
    %23 = vector.multi_reduction <add>, %22, %cst_19 [0] : vector<8x128xf32> to vector<128xf32>
    %24 = vector.shape_cast %23 : vector<128xf32> to vector<1x128xf32>
    %cst_20 = arith.constant 8.000000e+00 : f32
    %25 = vector.broadcast %cst_20 : f32 to vector<1x128xf32>
    %26 = arith.divf %24, %25 : vector<1x128xf32>
    %27 = vector.extract_strided_slice %21 {offsets = [8, 0], sizes = [8, 128], strides = [1, 1]} : vector<16x128xf32> to vector<8x128xf32>
    %cst_21 = arith.constant dense<0.000000e+00> : vector<128xf32>
    %28 = vector.multi_reduction <add>, %27, %cst_21 [0] : vector<8x128xf32> to vector<128xf32>
    %29 = vector.shape_cast %28 : vector<128xf32> to vector<1x128xf32>
    %cst_22 = arith.constant 8.000000e+00 : f32
    %30 = vector.broadcast %cst_22 : f32 to vector<1x128xf32>
    %31 = arith.divf %29, %30 : vector<1x128xf32>
    %32 = tpu.concatenate %26, %31 in 0 : vector<1x128xf32>, vector<1x128xf32> -> vector<2x128xf32>
    %c0_23 = arith.constant 0 : index
    %c0_24 = arith.constant 0 : index
    %33 = vector.load %arg8[%c0_23, %c0_24] : memref<1x128xf32, #tpu.memory_space<vmem>>, vector<1x128xf32>
    %34 = vector.broadcast %33 : vector<1x128xf32> to vector<2x128xf32>
    %35 = arith.mulf %32, %34 : vector<2x128xf32>
    %cst_25 = arith.constant dense<0.000000e+00> : vector<2xf32>
    %36 = vector.multi_reduction <add>, %35, %cst_25 [1] : vector<2x128xf32> to vector<2xf32>
    %37 = vector.shape_cast %36 : vector<2xf32> to vector<2x1xf32>
    %c0_26 = arith.constant 0 : index
    %c0_27 = arith.constant 0 : index
    %38 = vector.load %arg9[%c0_26, %c0_27] : memref<1x1xf32, #tpu.memory_space<vmem>>, vector<1x1xf32>
    %39 = vector.broadcast %38 : vector<1x1xf32> to vector<2x1xf32>
    %40 = arith.addf %37, %39 : vector<2x1xf32>
    %c0_28 = arith.constant 0 : index
    %c0_29 = arith.constant 0 : index
    %41 = vector.load %arg10[%c0_28, %c0_29] : memref<2x1xf32, #tpu.memory_space<vmem>>, vector<2x1xf32>
    tpu.vector_store %arg10[%c0_28, %c0_29], %40 {strides = array<i32>} : memref<2x1xf32, #tpu.memory_space<vmem>>, vector<2x1xf32>,
    return
  }
}

</mosaic_0001>

<bundles_post_ra>
// kernel: tpu_custom_call.1
= control target key start
LH: loop header
LB: loop body
LE: loop exit
PB: predicated region body
PF: predicated region fallthrough
CT: control target
= control target key end

     0   :  { %s573_s0 = inlined_call_operand.hbm [shape: f32[8,16], index: 0, kind: input, shape index: {}]   ;;  %s574_s1 = inlined_call_operand.hbm [shape: f32[8,16], index: 1, kind: input, shape index: {}]   ;;  %s575_s2 = inlined_call_operand.hbm [shape: f32[8,16], index: 2, kind: input, shape index: {}]   ;;  %s576_s3 = inlined_call_operand.hbm [shape: f32[16,128], index: 3, kind: input, shape index: {}]   ;;  %s577_s4 = inlined_call_operand.hbm [shape: f32[16,128], index: 4, kind: input, shape index: {}]   ;;  %s578_s5 = inlined_call_operand.vmem [shape: f32[1,128], index: 5, kind: input, shape index: {}]   ;;  %s579_s6 = inlined_call_operand.hbm [shape: f32[128,128], index: 6, kind: input, shape index: {}]   ;;  %s580_s7 = inlined_call_operand.vmem [shape: f32[1,128], index: 7, kind: input, shape index: {}]   ;;  %s581_s8 = inlined_call_operand.vmem [shape: f32[1,128], index: 8, kind: input, shape index: {}]   ;;  %s582_s9 = inlined_call_operand.<no memory space> [shape: f32[1,1], index: 9, kind: input, shape index: {}]   ;;  %s583_s10 = inlined_call_operand.vmem [shape: f32[2,1], index: 10, kind: output, shape index: {}]  }
   0x1   :  { %v15_v0 = vstv %s582_s9 }
   0x2   :  { %16 = vst [vmem:[#allocation2] sm:$0x1] %v15_v0 }
   0x3   :  { %17 = vsyncpa [#allocation4], 0 }
   0x4   :  { %18 = vsyncpa [#allocation6], 0 }
   0x5   :  { %19 = vsyncpa [#allocation9], 0  ;;  %s37_s17 = sshll.u32 %s574_s1, 4  ;;  %s38_s17 = int_to_ptr.hbm [resolvable:$true] %s37_s17 }
   0x6   :  { %20 = vsyncpa [#allocation12], 0  ;;  %s473_s18 = smov [#allocation5]   ;;  %s58_s22 = sshll.u32 %s576_s3, 4  ;;  %s59_s22 = int_to_ptr.hbm [resolvable:$true] %s58_s22 }
   0x7   :  { %s39_s19 = sshll.u32 %s473_s18, 4  ;;  %s474_s9 = smov [#allocation8]   ;;  %s40_s19 = int_to_ptr.vmem [resolvable:$true] %s39_s19 }
   0x8   :  { %42 = dma.hbm_to_vmem [thread:$0]  %s38_s17, 128, %s40_s19, [#allocation6]  }
   0x9   :  { %s60_s23 = sshll.u32 %s474_s9, 4  ;;  %s475_s24 = smov 128   ;;  %s61_s23 = int_to_ptr.vmem [resolvable:$true] %s60_s23 }
   0xa   :  { %s476_s25 = smov 8   ;;  %s26_s1 = sshll.u32 %s573_s0, 4  ;;  %s27_s1 = int_to_ptr.hbm [resolvable:$true] %s26_s1 }
   0xb   :  { %66 = dma.hbm_to_vmem [thread:$0]  %s59_s22, 256, %s61_s23, [#allocation9], %s475_s24, %s475_s24, %s476_s25  }
   0xc   :  { %s477_s28 = smov [#allocation3]   ;;  %s48_s3 = sshll.u32 %s575_s2, 4  ;;  %s49_s3 = int_to_ptr.hbm [resolvable:$true] %s48_s3 }
   0xd   :  { %s28_s29 = sshll.u32 %s477_s28, 4  ;;  %s478_s12 = smov [#allocation7]   ;;  %s29_s29 = int_to_ptr.vmem [resolvable:$true] %s28_s29 }
   0xe   :  { %31 = dma.hbm_to_vmem [thread:$0]  %s27_s1, 128, %s29_s29, [#allocation4]  }
   0xf   :  { %s50_s13 = sshll.u32 %s478_s12, 4  ;;  %s71_s16 = sshll.u32 %s577_s4, 4  ;;  %s51_s13 = int_to_ptr.vmem [resolvable:$true] %s50_s13  ;;  %s72_s16 = int_to_ptr.hbm [resolvable:$true] %s71_s16 }
  0x10   :  { %53 = dma.hbm_to_vmem [thread:$0]  %s49_s3, 128, %s51_s13, [#allocation6]  }
  0x11   :  { %s86_s18 = sshll.u32 %s579_s6, 4  ;;  %s479_s19 = smov [#allocation10]   ;;  %s87_s18 = int_to_ptr.hbm [resolvable:$true] %s86_s18 }
  0x12   :  { %s73_s20 = sshll.u32 %s479_s19, 4  ;;  %s480_s2 = smov [#allocation11]   ;;  %s74_s20 = int_to_ptr.vmem [resolvable:$true] %s73_s20 }
  0x13   :  { %79 = dma.hbm_to_vmem [thread:$0]  %s72_s16, 256, %s74_s20, [#allocation9], %s475_s24, %s475_s24, %s476_s25  }
  0x14   :  { %s88_s21 = sshll.u32 %s480_s2, 4  ;;  %s89_s21 = int_to_ptr.vmem [resolvable:$true] %s88_s21 }
  0x15   :  { %94 = dma.hbm_to_vmem [thread:$0]  %s87_s18, 2048, %s89_s21, [#allocation12], %s475_s24, %s475_s24, %s476_s25  }
  0x16   :  { %465 = dma.done.wait [#allocation4], 128  }
  0x17   :  { %466 = vsyncadd [#allocation4], 4294967168 }
  0x18   :  { %467 = dma.done.wait [#allocation6], 256  }
  0x19   :  { %468 = vsyncadd [#allocation6], 4294967040 }
  0x1a   :  { %469 = dma.done.wait [#allocation9], 512  }
  0x1b   :  { %470 = vsyncadd [#allocation9], 4294966784 }
  0x1c   :  { %471 = dma.done.wait [#allocation12], 2048  }
  0x1d   :  { %472 = vsyncadd [#allocation12], 4294965248  ;;  %v129_v1 = vld [vmem:[#allocation8 + $0x8] sm:$0xff]  ;;  %v155_v2 = vld [vmem:[#allocation10 + $0x8] sm:$0xff]  ;;  %vm130_vm0 = vcmask 130048   ;;  %v481_v35 = vmov 8.0  }
  0x1e   :  { %v128_v3 = vld [vmem:[#allocation8] sm:$0xff]  ;;  %148 = vmatpush.msra.mxu0 %v129_v1  ;;  %176 = vmatpush.msra.mxu1 %v155_v2  ;;  %v154_v4 = vld [vmem:[#allocation10] sm:$0xff]  ;;  %v125_v5 = vld [vmem:[#allocation3] sm:$0xff]  ;;  %319 = vrcp.f32 %v481_v35  ;;  %vm261_vm2 = vcmask 1040384   ;;  %vm268_vm3 = vcmask 1041408   ;;  %vm277_vm4 = vcmask 1024  }
  0x1f   :  { %v126_v6 = vld [vmem:[#allocation5] sm:$0xff]  ;;  %v210_v7 = vld [vmem:[#allocation11 + $0x78] sm:$0xff]  ;;  %v208_v9 = vld [vmem:[#allocation11 + $0x68] sm:$0xff] }
  0x20   :  { %149 = vmatpush.msra.mxu0 %v128_v3  ;;  %177 = vmatpush.msra.mxu1 %v154_v4  ;;  %v209_v8 = vld [vmem:[#allocation11 + $0x70] sm:$0xff]  ;;  %v207_v10 = vld [vmem:[#allocation11 + $0x60] sm:$0xff]  ;;  %v127_v11 = vld [vmem:[#allocation7] sm:$0xff] }
  0x21   :  { %287 = vmatmul.msk.f32.vlgmr.msra.gmra.mxu0 %vm130_vm0, %v125_v5  ;;  %288 = vmatmul.msk.f32.vlgmr.msra.gmra.mxu1 %vm130_vm0, %v126_v6  ;;  %v206_v12 = vld [vmem:[#allocation11 + $0x58] sm:$0xff]  ;;  %v205_v13 = vld [vmem:[#allocation11 + $0x50] sm:$0xff]  ;;  %v204_v14 = vld [vmem:[#allocation11 + $0x48] sm:$0xff] }
  0x22   :  { %215 = vmatpush.msra.mxu2 %v210_v7  ;;  %290 = vmatpush.msra.mxu3 %v210_v7  ;;  %v203_v15 = vld [vmem:[#allocation11 + $0x40] sm:$0xff]  ;;  %v202_v16 = vld [vmem:[#allocation11 + $0x38] sm:$0xff]  ;;  %v201_v17 = vld [vmem:[#allocation11 + $0x30] sm:$0xff] }
  0x23   :  { %v200_v18 = vld [vmem:[#allocation11 + $0x28] sm:$0xff]  ;;  %v199_v19 = vld [vmem:[#allocation11 + $0x20] sm:$0xff]  ;;  %v198_v20 = vld [vmem:[#allocation11 + $0x18] sm:$0xff] }
  0x24   :  { %216 = vmatpush.msra.mxu2 %v209_v8  ;;  %291 = vmatpush.msra.mxu3 %v209_v8  ;;  %v197_v21 = vld [vmem:[#allocation11 + $0x10] sm:$0xff]  ;;  %v196_v22 = vld [vmem:[#allocation11 + $0x8] sm:$0xff]  ;;  %v195_v23 = vld [vmem:[#allocation11] sm:$0xff]  ;;  %v320_v38 = vpop.eup %319 }
  0x25   :  { %v315_v24 = vld [vmem:[%s578_s5] ss:$0 sm:$0xff]  ;;  %v247_v41 = vmul.f32 8.0, %v320_v38  ;;  %vm251_vm1 = vweird.f32 %v320_v38 }
  0x26   :  { %217 = vmatpush.msra.mxu2 %v208_v9  ;;  %292 = vmatpush.msra.mxu3 %v208_v9  ;;  %v316_v34 = vld [vmem:[%s580_s7] ss:$0 sm:$0xff] }
  0x27   :  { %v248_v46 = vsub.f32 1.0, %v247_v41  ;;  %v317_v60 = vld [vmem:[%s581_s8] ss:$0 sm:$0xff] }
  0x28   :  { %218 = vmatpush.msra.mxu2 %v207_v10  ;;  %293 = vmatpush.msra.mxu3 %v207_v10  ;;  %v318_v2 = vld [vmem:[#allocation2] ss:$0 sm:$0xff] }
  0x29   :  { %289 = vmatmul.msk.f32.gmra.mxu1 %vm130_vm0, %v127_v11  ;;  %v249_v50 = vmul.f32 %v320_v38, %v248_v46 }
  0x2a   :  { %219 = vmatpush.msra.mxu2 %v206_v12  ;;  %294 = vmatpush.msra.mxu3 %v206_v12 }
  0x2b   :  { %v250_v54 = vadd.f32 %v320_v38, %v249_v50 }
  0x2c   :  { %220 = vmatpush.msra.mxu2 %v205_v13  ;;  %295 = vmatpush.msra.mxu3 %v205_v13 }
  0x2d   :  { %v252_v58 = vsel %vm251_vm1, %v320_v38, %v250_v54 }
  0x2e   :  { %221 = vmatpush.msra.mxu2 %v204_v14  ;;  %296 = vmatpush.msra.mxu3 %v204_v14 }
  0x30   :  { %222 = vmatpush.msra.mxu2 %v203_v15  ;;  %297 = vmatpush.msra.mxu3 %v203_v15 }
  0x32   :  { %223 = vmatpush.msra.mxu2 %v202_v16  ;;  %298 = vmatpush.msra.mxu3 %v202_v16 }
  0x34   :  { %224 = vmatpush.msra.mxu2 %v201_v17  ;;  %299 = vmatpush.msra.mxu3 %v201_v17 }
  0x36   :  { %225 = vmatpush.msra.mxu2 %v200_v18  ;;  %300 = vmatpush.msra.mxu3 %v200_v18 }
  0x38   :  { %226 = vmatpush.msra.mxu2 %v199_v19  ;;  %301 = vmatpush.msra.mxu3 %v199_v19 }
  0x3a   :  { %227 = vmatpush.msra.mxu2 %v198_v20  ;;  %302 = vmatpush.msra.mxu3 %v198_v20 }
  0x3c   :  { %228 = vmatpush.msra.mxu2 %v197_v21  ;;  %303 = vmatpush.msra.mxu3 %v197_v21 }
  0x3e   :  { %229 = vmatpush.msra.mxu2 %v196_v22  ;;  %304 = vmatpush.msra.mxu3 %v196_v22 }
  0x40   :  { %230 = vmatpush.msra.mxu2 %v195_v23  ;;  %305 = vmatpush.msra.mxu3 %v195_v23 }
  0x9e   :  { %v151_v25 = vpop.f32.mrf.mxu0  ;;  %v179_v26 = vpop.f32.mrf.mxu1 }
  0x9f   :  { %v186_v27 = vadd.f32 %v179_v26, %v151_v25 }
  0xa1   :  { %v191_v28 = vadd.f32 %v315_v24, %v186_v27 }
  0xa3   :  { %v193_v29 = vmax.f32 %v191_v28, 0.0 }
  0xa5   :  { %231 = vmatmul.f32.vlgmr.msra.gmra.mxu2 %v193_v29 }
  0xa6   :  { %v182_v30 = vpop.f32.mrf.mxu1 }
  0xa7   :  { %v187_v31 = vadd.f32 %v182_v30, %v151_v25 }
  0xa9   :  { %v192_v32 = vadd.f32 %v315_v24, %v187_v31 }
  0xab   :  { %v194_v33 = vmax.f32 %v192_v32, 0.0 }
  0xad   :  { %234 = vmatmul.f32.vlgmr.msra.gmra.mxu3 %v194_v33 }
 0x128   :  { %v232_v36 = vpop.f32.mrf.mxu2 }
 0x129   :  { %v233_v37 = vadd.f32 %v316_v34, %v232_v36 }
 0x12b   :  { %v238_v39 = vmax.f32 %v233_v37, 0.0 }
 0x12d   :  { %v240_v40 = vrot.slane %v238_v39, 4 }
 0x12f   :  { %v241_v42 = vadd.f32 %v240_v40, %v238_v39 }
 0x130   :  { %v235_v43 = vpop.f32.mrf.mxu3 }
 0x131   :  { %v242_v44 = vrot.slane %v241_v42, 2  ;;  %v236_v45 = vadd.f32 %v316_v34, %v235_v43 }
 0x133   :  { %v239_v47 = vmax.f32 %v236_v45, 0.0  ;;  %v243_v48 = vadd.f32 %v242_v44, %v241_v42 }
 0x135   :  { %v254_v49 = vrot.slane %v239_v47, 4  ;;  %v244_v52 = vrot.slane %v243_v48, 1 }
 0x137   :  { %v255_v51 = vadd.f32 %v254_v49, %v239_v47  ;;  %v245_v56 = vadd.f32 %v244_v52, %v243_v48 }
 0x139   :  { %v256_v53 = vrot.slane %v255_v51, 2  ;;  %v253_v61 = vmul.f32 %v252_v58, %v245_v56 }
 0x13b   :  { %v257_v55 = vadd.f32 %v256_v53, %v255_v51 }
 0x13d   :  { %v258_v57 = vrot.slane %v257_v55, 1 }
 0x13f   :  { %v259_v59 = vadd.f32 %v258_v57, %v257_v55 }
 0x141   :  { %v260_v62 = vmul.f32 %v259_v59, %v252_v58 }
 0x143   :  { %v262_v63 = vsel %vm261_vm2, %v253_v61, %v260_v62 }
 0x144   :  { %v267_v0 = vmul.f32 %v317_v60, %v262_v63 }
 0x146   :  { %v269_v1 = vsel %vm268_vm3, %v267_v0, 0.0 }
 0x147   :  { %270 = vadd.xlane.f32.xlu0 %v269_v1 }
 0x1ba   :  { %v271_v3 = vpop.xlane.xlu0 %270 }
 0x1bb   :  { %v276_v4 = vadd.f32 %v318_v2, %v271_v3 }
 0x1bd   :  { %278 = vst.msk [vmem:[%s583_s10] sm:$0x3] %vm277_vm4, %v276_v4 }
 0x1be   :  { %283 = vsyncpa [#allocation4], 1 }
 0x1bf   :  { %284 = vsyncpa [#allocation6], 1 }
 0x1c0   :  { %285 = vsyncpa [#allocation9], 1 }
 0x1c1   :  { %286 = vsyncpa [#allocation12], 1 }

</bundles_post_ra>
